<compile_context>
chip_gen: v5e
topology: v5e:2x2
jax: 0.10.0
libtpu: 0.0.40
codegen_flags: <defaults>
</compile_context>

<pallas_src>
import jax
import jax.numpy as jnp
from jax.experimental import pallas as pl
from jax.experimental.pallas import tpu as pltpu


TILE_ROWS = 1024     # max rows per grid step (footprint ~1 MiB/step -> fits v5e/v6e/v7x)
ROW_ALIGN = 16       # bf16 packs (16, 128) per vreg -> keep row tiles multiples of 16
_LANES = 128         # pad fused output width to a multiple of the vreg lane width


def _round_up(x: int, m: int) -> int:
    return ((x + m - 1) // m) * m


def _row_plan(n: int):
    """Return (padded_rows, row_tile). Rows are padded to a multiple of the
    tile so stores are always unmasked full blocks; for larger batches the
    grid gets an even number of balanced steps (v7x two-core sharding)."""
    if n <= 256:
        n_pad = _round_up(n, ROW_ALIGN)
        return n_pad, n_pad
    steps = max(2, -(-n // TILE_ROWS))
    if steps % 2:
        steps += 1
    tile = _round_up(-(-n // steps), ROW_ALIGN)
    return tile * steps, tile


# ---------------------------------------------------------------------------
# Pallas kernel: one lane-dense matmul  out = X @ W_fused + b
# ---------------------------------------------------------------------------

def _fused_linear_kernel(x_ref, w_ref, b_ref, o_ref):
    # x/w are bf16, accumulate in f32 on the MXU, bias add + store in f32.
    o_ref[...] = (
        jnp.dot(x_ref[...], w_ref[...], preferred_element_type=jnp.float32)
        + b_ref[...]
    ).astype(o_ref.dtype)


def _fused_matmul(Xc, w_pad, b_pad):
    """Xc: (n_pad_rows, K) bf16; w_pad: (K, n_out_pad) bf16; b_pad: (1, n_out_pad) f32."""
    n_rows, k = Xc.shape
    n_out_pad = w_pad.shape[1]
    _, tile = _row_plan(n_rows)
    # n_rows is already padded to a multiple of tile by the caller.
    grid = (n_rows // tile,)

    cost = pl.CostEstimate(
        flops=2 * n_rows * k * n_out_pad,
        transcendentals=0,
        bytes_accessed=(n_rows * k * 2 + k * n_out_pad * 2
                        + n_out_pad * 4 + n_rows * n_out_pad * 4),
    )

    return pl.pallas_call(
        _fused_linear_kernel,
        out_shape=jax.ShapeDtypeStruct((n_rows, n_out_pad), jnp.float32),
        grid=grid,
        in_specs=[
            pl.BlockSpec((tile, k), lambda i: (i, 0)),
            # constant index_map -> weights / bias stay VMEM-resident across steps
            pl.BlockSpec((k, n_out_pad), lambda i: (0, 0)),
            pl.BlockSpec((1, n_out_pad), lambda i: (0, 0)),
        ],
        out_specs=pl.BlockSpec((tile, n_out_pad), lambda i: (i, 0)),
        compiler_params=pltpu.CompilerParams(
            dimension_semantics=("parallel",)),
        cost_estimate=cost,
    )(Xc, w_pad, b_pad)


# ---------------------------------------------------------------------------
# jitted forward builders (constructed once per layer in __init__)
# ---------------------------------------------------------------------------

def _build_forwards(n_s: int, n_p: int, first_layer: bool):
    def _slab(*args):
        if first_layer:
            X, w_pad, b_pad = args
            Xc = X
        else:
            X_s, X_p0, X_p1, w_pad, b_pad = args
            Xc = jnp.concatenate([X_s, X_p0, X_p1], axis=1)
        n = Xc.shape[0]
        Xc = Xc.astype(jnp.bfloat16)
        n_rows_pad, _ = _row_plan(n)
        if n_rows_pad != n:
            Xc = jnp.pad(Xc, ((0, n_rows_pad - n), (0, 0)))
        out = _fused_matmul(Xc, w_pad, b_pad)
        return out[:n]

    def _split(*args):
        out = _slab(*args)
        rep_s = out[:, :n_s]
        rep_p0 = out[:, n_s:n_s + n_p]
        rep_p1 = out[:, n_s + n_p:n_s + 2 * n_p]
        return rep_s, rep_p0, rep_p1

    return jax.jit(_split), jax.jit(_slab)


# ---------------------------------------------------------------------------
# Parameter init (mirrors nn.Linear default init; weights stored as W.T)
# ---------------------------------------------------------------------------

def _init_linear(key, n_in, n_out, dtype=jnp.float32):
    kw, kb = jax.random.split(key)
    bound = 1.0 / float(n_in) ** 0.5
    w = jax.random.uniform(kw, (n_in, n_out), dtype, minval=-bound, maxval=bound)
    b = jax.random.uniform(kb, (1, n_out), dtype, minval=-bound, maxval=bound)
    return w, b


class FlexTESplitLayerPallas:
    """JAX/Pallas re-implementation of FlexTESplitLayer.forward (eval mode)."""

    def __init__(self, name, n_units_in, n_units_in_p, n_units_s, n_units_p,
                 first_layer, dropout=False, dropout_prob=0.5,
                 key=None, dtype=jnp.float32):
        # TODO(synk): dropout is identity at inference time and is omitted here.
        if key is None:
            key = jax.random.PRNGKey(0)
        if first_layer and n_units_in_p != n_units_in:
            raise ValueError(
                "first_layer=True requires n_units_in_p == n_units_in "
                "(all three heads consume the same X).")
        self.name = name
        self.first_layer = first_layer
        self.n_units_in = n_units_in
        self.n_units_in_p = n_units_in_p
        self.n_units_s = n_units_s
        self.n_units_p = n_units_p

        ks, kp0, kp1 = jax.random.split(key, 3)
        # raw (un-fused) parameters, kept for inspection / reference checks
        self.w_s, self.b_s = _init_linear(ks, n_units_in, n_units_s, dtype)
        self.w_p0, self.b_p0 = _init_linear(kp0, n_units_in_p, n_units_p, dtype)
        self.w_p1, self.b_p1 = _init_linear(kp1, n_units_in_p, n_units_p, dtype)

        n_out = n_units_s + 2 * n_units_p
        n_pad = _round_up(n_out, _LANES)
        self._n_out = n_out
        self._n_pad = n_pad

        b_cat = jnp.concatenate([self.b_s, self.b_p0, self.b_p1], axis=1)
        self._b_pad = jnp.pad(b_cat, ((0, 0), (0, n_pad - n_out))).astype(jnp.float32)

        if first_layer:
            # all three heads consume the same X
            w_cat = jnp.concatenate([self.w_s, self.w_p0, self.w_p1], axis=1)
            self._w_pad = jnp.pad(
                w_cat, ((0, 0), (0, n_pad - n_out))).astype(jnp.bfloat16)
        else:
            # single block-structured weight so that
            #   [X_s | X_p0 | X_p1] @ W_big == [X_s@w_s | cat(X_s,X_p0)@w_p0 | cat(X_s,X_p1)@w_p1 | 0]
            d_s = n_units_in
            d_p = n_units_in_p - n_units_in
            if d_p < 0:
                raise ValueError("n_units_in_p must be >= n_units_in for split layers.")
            k_in = d_s + 2 * d_p
            w_big = jnp.zeros((k_in, n_pad), jnp.float32)
            w_big = w_big.at[:d_s, :n_units_s].set(self.w_s)
            w_big = w_big.at[:d_s, n_units_s:n_units_s + n_units_p].set(self.w_p0[:d_s])
            w_big = w_big.at[:d_s, n_units_s + n_units_p:n_out].set(self.w_p1[:d_s])
            w_big = w_big.at[d_s:d_s + d_p, n_units_s:n_units_s + n_units_p].set(self.w_p0[d_s:])
            w_big = w_big.at[d_s + d_p:, n_units_s + n_units_p:n_out].set(self.w_p1[d_s:])
            self._w_pad = w_big.astype(jnp.bfloat16)

        self._fwd, self._fwd_slab = _build_forwards(n_units_s, n_units_p, first_layer)

    # -- forward (original module contract) --------------------------------
    def __call__(self, tensors):
        if self.first_layer and len(tensors) != 2:
            raise ValueError(
                "Invalid number of tensor for the FlexSplitLayer layer. It "
                "requires the features vector and the treatments vector")
        if not self.first_layer and len(tensors) != 4:
            raise ValueError(
                "Invalid number of tensor for the FlexSplitLayer layer. It "
                "requires X_s, X_p0, X_p1 and W as input")

        if self.first_layer:
            X, W = tensors
            rep_s, rep_p0, rep_p1 = self._fwd(X, self._w_pad, self._b_pad)
        else:
            X_s, X_p0, X_p1, W = tensors
            rep_s, rep_p0, rep_p1 = self._fwd(
                X_s, X_p0, X_p1, self._w_pad, self._b_pad)
        return [rep_s, rep_p0, rep_p1, W]

    # -- lane-dense slab output, for chaining layers without re-slicing ----
    def forward_slab(self, tensors):
        """Returns [rep_s | rep_p0 | rep_p1 | pad] as one (n, n_pad) slab + W."""
        if self.first_layer:
            X, W = tensors
            slab = self._fwd_slab(X, self._w_pad, self._b_pad)
        else:
            X_s, X_p0, X_p1, W = tensors
            slab = self._fwd_slab(X_s, X_p0, X_p1, self._w_pad, self._b_pad)
        return slab, W


# ---------------------------------------------------------------------------
# Demo / self-check
# ---------------------------------------------------------------------------

if __name__ == "__main__":
    key = jax.random.PRNGKey(0)
    k_param, k_x, k_xs, k_xp0, k_xp1, k_w, k_big = jax.random.split(key, 7)

    batch = 8
    n_units_in = 32     # shared input dim
    n_units_p_in = 16   # extra private input dim (X_p0 / X_p1 width)
    n_units_s = 32      # shared output dim
    n_units_p = 16      # private output dim

    TOL = 5e-2          # bf16 data path vs f32 reference

    # ---- first_layer=True: net_p* consume X directly (n_units_in_p == n_units_in)
    layer_first = FlexTESplitLayerPallas(
        "first", n_units_in=n_units_in, n_units_in_p=n_units_in,
        n_units_s=n_units_s, n_units_p=n_units_p, first_layer=True,
        key=k_param)
    X = jax.random.normal(k_x, (batch, n_units_in), jnp.float32)
    Wtreat = (jax.random.uniform(k_w, (batch, 1)) > 0.5).astype(jnp.float32)
    out_first = layer_first([X, Wtreat])
    jax.block_until_ready(out_first)

    ref_s = X @ layer_first.w_s + layer_first.b_s
    ref_p0 = X @ layer_first.w_p0 + layer_first.b_p0
    ref_p1 = X @ layer_first.w_p1 + layer_first.b_p1
    assert out_first[0].shape == (batch, n_units_s)
    assert jnp.allclose(out_first[0], ref_s, atol=TOL)
    assert jnp.allclose(out_first[1], ref_p0, atol=TOL)
    assert jnp.allclose(out_first[2], ref_p1, atol=TOL)
    assert jnp.array_equal(out_first[3], Wtreat)

    # ---- first_layer=False: net_p* consume cat([X_s, X_pk], dim=1)
    layer_split = FlexTESplitLayerPallas(
        "split", n_units_in=n_units_in,
        n_units_in_p=n_units_in + n_units_p_in,
        n_units_s=n_units_s, n_units_p=n_units_p, first_layer=False,
        key=jax.random.fold_in(k_param, 1))
    X_s = jax.random.normal(k_xs, (batch, n_units_in), jnp.float32)
    X_p0 = jax.random.normal(k_xp0, (batch, n_units_p_in), jnp.float32)
    X_p1 = jax.random.normal(k_xp1, (batch, n_units_p_in), jnp.float32)
    out_split = layer_split([X_s, X_p0, X_p1, Wtreat])
    jax.block_until_ready(out_split)

    ref_s2 = X_s @ layer_split.w_s + layer_split.b_s
    ref_p02 = jnp.concatenate([X_s, X_p0], axis=1) @ layer_split.w_p0 + layer_split.b_p0
    ref_p12 = jnp.concatenate([X_s, X_p1], axis=1) @ layer_split.w_p1 + layer_split.b_p1
    assert jnp.allclose(out_split[0], ref_s2, atol=TOL)
    assert jnp.allclose(out_split[1], ref_p02, atol=TOL)
    assert jnp.allclose(out_split[2], ref_p12, atol=TOL)
    assert jnp.array_equal(out_split[3], Wtreat)

    # ---- slab output path (lane-dense inter-layer format)
    slab, _ = layer_first.forward_slab([X, Wtreat])
    jax.block_until_ready(slab)
    assert slab.shape == (batch, layer_first._n_pad)
    assert jnp.allclose(slab[:, :n_units_s], ref_s, atol=TOL)
    assert jnp.allclose(slab[:, layer_first._n_out:], 0.0)   # padded columns are zero

    # ---- larger batch: exercises multi-step row grid + batch padding
    big = 600
    Xb = jax.random.normal(k_big, (big, n_units_in), jnp.float32)
    Wb = jnp.ones((big, 1), jnp.float32)
    out_big = layer_first([Xb, Wb])
    jax.block_until_ready(out_big)
    assert out_big[0].shape == (big, n_units_s)
    assert jnp.allclose(out_big[0], Xb @ layer_first.w_s + layer_first.b_s, atol=TOL)
    assert jnp.allclose(out_big[1], Xb @ layer_first.w_p0 + layer_first.b_p0, atol=TOL)
    assert jnp.allclose(out_big[2], Xb @ layer_first.w_p1 + layer_first.b_p1, atol=TOL)

    print("KERNEL_OK")
</pallas_src>

<mosaic_0001>
module attributes {stable_mosaic.version = 11 : i64} {
  func.func @_fused_linear_kernel(%arg0: i32, %arg1: memref<16x32xbf16, #tpu.memory_space<vmem>>, %arg2: memref<32x128xbf16, #tpu.memory_space<vmem>>, %arg3: memref<1x128xf32, #tpu.memory_space<vmem>>, %arg4: memref<16x128xf32, #tpu.memory_space<vmem>>) attributes {dimension_semantics = [#tpu.dimension_semantics<parallel>], iteration_bounds = array<i64: 1>, scalar_prefetch = 0 : i64, scratch_operands = 0 : i64, tpu.core_type = #tpu.core_type<tc>, window_params = [{transform_indices = @transform_0, window_bounds = array<i64: 16, 32>}, {pipeline_mode = #tpu.pipeline_mode<synchronous>, transform_indices = @transform_1, window_bounds = array<i64: 32, 128>}, {pipeline_mode = #tpu.pipeline_mode<synchronous>, transform_indices = @transform_2, window_bounds = array<i64: 1, 128>}, {transform_indices = @transform_3, window_bounds = array<i64: 16, 128>}]} {
    %c0 = arith.constant 0 : index
    %c0_0 = arith.constant 0 : index
    %0 = vector.load %arg1[%c0, %c0_0] : memref<16x32xbf16, #tpu.memory_space<vmem>>, vector<16x32xbf16>
    %c0_1 = arith.constant 0 : index
    %c0_2 = arith.constant 0 : index
    %1 = vector.load %arg2[%c0_1, %c0_2] : memref<32x128xbf16, #tpu.memory_space<vmem>>, vector<32x128xbf16>
    %cst = arith.constant dense<0.000000e+00> : vector<16x128xf32>
    %2 = tpu.matmul %0, %1, %cst {dimension_numbers = #tpu.dot_dimension_numbers<[1], [0], [0], [1], [0, 0, 1, 1], [], []>} : vector<16x32xbf16>, vector<32x128xbf16>, vector<16x128xf32> -> vector<16x128xf32>
    %c0_3 = arith.constant 0 : index
    %c0_4 = arith.constant 0 : index
    %3 = vector.load %arg3[%c0_3, %c0_4] : memref<1x128xf32, #tpu.memory_space<vmem>>, vector<1x128xf32>
    %4 = vector.broadcast %3 : vector<1x128xf32> to vector<16x128xf32>
    %5 = arith.addf %2, %4 : vector<16x128xf32>
    %c0_5 = arith.constant 0 : index
    %c0_6 = arith.constant 0 : index
    %6 = vector.load %arg4[%c0_5, %c0_6] : memref<16x128xf32, #tpu.memory_space<vmem>>, vector<16x128xf32>
    tpu.vector_store %arg4[%c0_5, %c0_6], %5 {strides = array<i32>} : memref<16x128xf32, #tpu.memory_space<vmem>>, vector<16x128xf32>,
    return
  }
  func.func @transform_0(%arg0: i32) -> (i32, i32) {
    %c0_i32 = arith.constant 0 : i32
    %c0_i32_0 = arith.constant 0 : i32
    return %arg0, %c0_i32 : i32, i32
  }
  func.func @transform_1(%arg0: i32) -> (i32, i32) {
    %c0_i32 = arith.constant 0 : i32
    %c0_i32_0 = arith.constant 0 : i32
    %c0_i32_1 = arith.constant 0 : i32
    return %c0_i32, %c0_i32_0 : i32, i32
  }
  func.func @transform_2(%arg0: i32) -> (i32, i32) {
    %c0_i32 = arith.constant 0 : i32
    %c0_i32_0 = arith.constant 0 : i32
    %c0_i32_1 = arith.constant 0 : i32
    return %c0_i32, %c0_i32_0 : i32, i32
  }
  func.func @transform_3(%arg0: i32) -> (i32, i32) {
    %c0_i32 = arith.constant 0 : i32
    %c0_i32_0 = arith.constant 0 : i32
    return %arg0, %c0_i32 : i32, i32
  }
}

</mosaic_0001>

<bundles_post_ra>
// kernel: _split.1
= control target key start
LH: loop header
LB: loop body
LE: loop exit
PB: predicated region body
PF: predicated region fallthrough
CT: control target
= control target key end

     0   :  { %vm42_vm0 = vcmask 261120   ;;  %s121_s1 = inlined_call_operand.vmem [shape: bf16[32,128], index: 1, kind: input, shape index: {}]   ;;  %s122_s2 = inlined_call_operand.vmem [shape: f32[1,128], index: 2, kind: input, shape index: {}]   ;;  %s123_s0 = inlined_call_operand.vmem [shape: bf16[16,32], index: 0, kind: input, shape index: {}]   ;;  %s124_s3 = inlined_call_operand.vmem [shape: f32[16,128], index: 3, kind: output, shape index: {}]  }
   0x1   :  { %v81_v0 = vld [vmem:[%s121_s1 + $0x8] sm:$0xff]  ;;  %v80_v1 = vld [vmem:[%s121_s1] sm:$0xff] }
   0x2   :  { %52 = vmatpush.bf16.msra.mxu0 %v81_v0  ;;  %v79_v2 = vld [vmem:[%s123_s0] sm:$0xff] }
   0x3   :  { %v82_v3 = vld [vmem:[%s122_s2] ss:$0 sm:$0xff] }
   0x6   :  { %53 = vmatpush.bf16.msra.mxu0 %v80_v1 }
   0x9   :  { %78 = vmatmul.msk.bf16.vlgmr.msra.gmra.mxu0 %vm42_vm0, %v79_v2 }
  0x86   :  { %v55_v4 = vpop.f32.mrf.mxu0 }
  0x87   :  { %v56_v5 = vadd.f32 %v82_v3, %v55_v4 }
  0x89   :  { %60 = vst [vmem:[%s124_s3] sm:$0xff] %v56_v5 }
  0x8e   :  { %v57_v6 = vpop.f32.mrf.mxu0 }
  0x8f   :  { %v58_v7 = vadd.f32 %v82_v3, %v57_v6 }
  0x91   :  { %61 = vst [vmem:[%s124_s3 + $0x8] sm:$0xff] %v58_v7 }

</bundles_post_ra>
